<compile_context>
chip_gen: v5e
topology: v5e:2x2
jax: 0.10.0
libtpu: 0.0.40
codegen_flags: <defaults>
</compile_context>

<pallas_src>
import functools

import jax
import jax.numpy as jnp
from jax.experimental import pallas as pl
from jax.experimental.pallas import tpu as pltpu

_TL_MAX = 8192            # max lanes per block (64 unrolled 128-lane chunks)
_BLOCK_ELEMS = 64 * 8192  # ~2 MiB f32 per input per block


def _cdiv(a, b):
    return -(-a // b)


def _round_up(x, m):
    return _cdiv(x, m) * m


def _choose_tb(nc):
    """Rows per block: multiple of 8 (or the full row count when nc < 8)."""
    if nc < 8:
        return nc
    best = 8
    for cand in (16, 32, 64):
        # keep padded (garbage, compute-only) rows <= 25% of real rows
        if _round_up(nc, cand) * 4 <= nc * 5:
            best = cand
    # v7x megacore: prefer >= 2 blocks on the 'parallel' row axis when possible
    if best > 8 and _cdiv(nc, best) < 2:
        best = max(8, _round_up(_cdiv(nc, 2), 8))
    return best


def _choose_tl(l, tb):
    """Lanes per block: multiple of 128 (or the full lane count when l < 128)."""
    if l < 128:
        return l
    budget = max(128, (_BLOCK_ELEMS // max(tb, 1)) // 128 * 128)
    budget = min(budget, _TL_MAX)
    return min(_round_up(l, 128), budget)


def _dice_sums_kernel(pred_ref, tgt_ref, inter_ref, psum_ref, tsum_ref,
                      *, power, l_total, tl, ragged):
    # pred_ref/tgt_ref: (TB, TL) input blocks.
    # inter_ref/psum_ref/tsum_ref: (TB, 128) f32 lane-partial accumulators,
    # resident across the L (reduction) grid axis.
    j = pl.program_id(1)

    @pl.when(j == 0)
    def _init():
        inter_ref[...] = jnp.zeros_like(inter_ref)
        psum_ref[...] = jnp.zeros_like(psum_ref)
        tsum_ref[...] = jnp.zeros_like(tsum_ref)

    tb = pred_ref.shape[0]
    if ragged:
        # Global-column validity mask support (last L block extends past l).
        lane = jax.lax.broadcasted_iota(jnp.int32, (tb, 128), 1)
        col0 = j * tl  # first global column of this block

    nchunks = _cdiv(tl, 128)
    for k in range(nchunks):
        c0 = k * 128
        w = min(128, tl - c0)
        # Fused pass: load each (TB, <=128) slice of pred/target exactly once.
        p = pred_ref[:, c0:c0 + w].astype(jnp.float32)
        t = tgt_ref[:, c0:c0 + w].astype(jnp.float32)
        it = p * t
        if power == 1:
            pp, tp = p, t
        elif power == 2:
            pp, tp = p * p, t * t          # VPU multiply, not EUP pow
        else:
            pp, tp = p ** power, t ** power
        if ragged:
            # Mask AFTER the arithmetic so garbage (possibly inf/NaN) lanes in
            # the out-of-bounds tail contribute exactly 0 for any `power`.
            valid = lane[:, :w] < (l_total - col0 - c0)
            it = jnp.where(valid, it, 0.0)
            pp = jnp.where(valid, pp, 0.0)
            tp = jnp.where(valid, tp, 0.0)
        inter_ref[:, 0:w] += it
        psum_ref[:, 0:w] += pp
        tsum_ref[:, 0:w] += tp


def dice_loss(pred, target, *, smooth=100.0, power=1, reduce=True):
    """Pallas DiceLoss forward. pred/target: (N, C, *spatial), same shape."""
    if pred.shape != target.shape:
        raise ValueError(
            "Target size ({}) must be the same as pred size ({})".format(
                target.shape, pred.shape))
    shape = pred.shape
    n = shape[0] if len(shape) > 0 else 1
    c = shape[1] if len(shape) > 1 else 1
    nc = n * c
    l = 1
    for d in shape[2:]:
        l *= d

    # Free reshape (contiguous); no jnp.pad HBM rewrite of the inputs.
    pred2 = pred.reshape(nc, l)
    tgt2 = target.reshape(nc, l)

    tb = _choose_tb(nc)
    tl = _choose_tl(l, tb)
    grid_nc = _cdiv(nc, tb)
    grid_l = _cdiv(l, tl)
    ragged = (l % tl) != 0
    rows_out = grid_nc * tb

    itemsize = jnp.dtype(pred2.dtype).itemsize
    transc = 0 if power in (1, 2) else 2 * nc * l

    out_shapes = tuple(jax.ShapeDtypeStruct((rows_out, 128), jnp.float32)
                       for _ in range(3))

    kernel = functools.partial(_dice_sums_kernel, power=power,
                               l_total=l, tl=tl, ragged=ragged)

    inter_p, psum_p, tsum_p = pl.pallas_call(
        kernel,
        out_shape=out_shapes,
        grid_spec=pltpu.PrefetchScalarGridSpec(
            num_scalar_prefetch=0,
            grid=(grid_nc, grid_l),
            in_specs=[
                pl.BlockSpec((tb, tl), lambda i, j: (i, j)),
                pl.BlockSpec((tb, tl), lambda i, j: (i, j)),
            ],
            out_specs=[
                pl.BlockSpec((tb, 128), lambda i, j: (i, 0)),
                pl.BlockSpec((tb, 128), lambda i, j: (i, 0)),
                pl.BlockSpec((tb, 128), lambda i, j: (i, 0)),
            ],
        ),
        compiler_params=pltpu.CompilerParams(
            dimension_semantics=("parallel", "arbitrary"),
            vmem_limit_bytes=32 * 1024 * 1024,
        ),
        cost_estimate=pl.CostEstimate(
            flops=4 * nc * l,
            transcendentals=transc,
            bytes_accessed=2 * nc * l * itemsize + 3 * rows_out * 128 * 4,
        ),
    )(pred2, tgt2)

    # Tiny epilogue in plain JAX: final cross-lane sums + dice ratio / mean.
    inter = jnp.sum(inter_p[:nc], axis=-1)
    psum = jnp.sum(psum_p[:nc], axis=-1)
    tsum = jnp.sum(tsum_p[:nc], axis=-1)

    if reduce:
        # dice_loss: per-(n, c) dice, then mean.
        loss = 1.0 - (2.0 * inter + smooth) / (psum + tsum + smooth)
        return jnp.mean(loss)
    else:
        # dice_loss_batch: one global dice over the fully flattened tensors.
        inter_all = jnp.sum(inter)
        denom = jnp.sum(psum) + jnp.sum(tsum) + smooth
        return 1.0 - (2.0 * inter_all + smooth) / denom


def dice_loss_ref(pred, target, *, smooth=100.0, power=1, reduce=True):
    """Pure-JAX reference matching the PyTorch forward."""
    if reduce:
        n, c = pred.shape[0], pred.shape[1]
        iflat = pred.reshape(n, c, -1).astype(jnp.float32)
        tflat = target.reshape(n, c, -1).astype(jnp.float32)
        inter = (iflat * tflat).sum(-1)
        if power == 1:
            denom = iflat.sum(-1) + tflat.sum(-1) + smooth
        else:
            denom = (iflat ** power).sum(-1) + (tflat ** power).sum(-1) + smooth
        loss = 1.0 - (2.0 * inter + smooth) / denom
        return loss.mean()
    else:
        iflat = pred.reshape(-1).astype(jnp.float32)
        tflat = target.reshape(-1).astype(jnp.float32)
        inter = (iflat * tflat).sum()
        if power == 1:
            denom = iflat.sum() + tflat.sum() + smooth
        else:
            denom = (iflat ** power).sum() + (tflat ** power).sum() + smooth
        return 1.0 - (2.0 * inter + smooth) / denom


if __name__ == "__main__":
    key = jax.random.PRNGKey(0)
    k1, k2, k3, k4 = jax.random.split(key, 4)

    # Primary shape (N, C, H, W) = (2, 4, 16, 16): exact (8, 256) tiling.
    pred = jax.nn.sigmoid(
        jax.random.normal(k1, (2, 4, 16, 16), dtype=jnp.float32))
    target = (jax.random.uniform(k2, (2, 4, 16, 16)) > 0.5).astype(jnp.float32)

    # reduce=True (module default)
    out = jax.block_until_ready(dice_loss(pred, target))
    ref = jax.block_until_ready(dice_loss_ref(pred, target))
    assert jnp.allclose(out, ref, rtol=1e-5, atol=1e-5), (out, ref)

    # reduce=False path (dice_loss_batch), same kernel sums
    out_b = jax.block_until_ready(dice_loss(pred, target, reduce=False))
    ref_b = jax.block_until_ready(dice_loss_ref(pred, target, reduce=False))
    assert jnp.allclose(out_b, ref_b, rtol=1e-5, atol=1e-5), (out_b, ref_b)

    # power=2 path (explicit VPU square, no EUP pow)
    out_p2 = jax.block_until_ready(dice_loss(pred, target, power=2))
    ref_p2 = jax.block_until_ready(dice_loss_ref(pred, target, power=2))
    assert jnp.allclose(out_p2, ref_p2, rtol=1e-5, atol=1e-5), (out_p2, ref_p2)

    # Ragged shape: L = 576 not a multiple of the lane block -> exercises the
    # no-pad path with in-kernel lane masking.
    pred_r = jax.nn.sigmoid(
        jax.random.normal(k3, (2, 3, 24, 24), dtype=jnp.float32))
    target_r = (jax.random.uniform(k4, (2, 3, 24, 24)) > 0.5).astype(jnp.float32)
    out_r = jax.block_until_ready(dice_loss(pred_r, target_r))
    ref_r = jax.block_until_ready(dice_loss_ref(pred_r, target_r))
    assert jnp.allclose(out_r, ref_r, rtol=1e-5, atol=1e-5), (out_r, ref_r)

    print("KERNEL_OK")
</pallas_src>

<mosaic_0001>
module attributes {stable_mosaic.version = 11 : i64} {
  func.func @_dice_sums_kernel(%arg0: i32, %arg1: i32, %arg2: memref<8x256xf32, #tpu.memory_space<vmem>>, %arg3: memref<8x256xf32, #tpu.memory_space<vmem>>, %arg4: memref<8x128xf32, #tpu.memory_space<vmem>>, %arg5: memref<8x128xf32, #tpu.memory_space<vmem>>, %arg6: memref<8x128xf32, #tpu.memory_space<vmem>>) attributes {dimension_semantics = [#tpu.dimension_semantics<parallel>, #tpu.dimension_semantics<arbitrary>], iteration_bounds = array<i64: 1, 1>, scalar_prefetch = 0 : i64, scratch_operands = 0 : i64, tpu.core_type = #tpu.core_type<tc>, window_params = [{transform_indices = @transform_0, window_bounds = array<i64: 8, 256>}, {transform_indices = @transform_1, window_bounds = array<i64: 8, 256>}, {transform_indices = @transform_2, window_bounds = array<i64: 8, 128>}, {transform_indices = @transform_3, window_bounds = array<i64: 8, 128>}, {transform_indices = @transform_4, window_bounds = array<i64: 8, 128>}]} {
    %c0_i32 = arith.constant 0 : i32
    %0 = arith.cmpi eq, %arg1, %c0_i32 : i32
    %1 = arith.extui %0 : i1 to i32
    %c0_i32_0 = arith.constant 0 : i32
    %2 = arith.cmpi ne, %1, %c0_i32_0 : i32
    scf.if %2 {
      %cst = arith.constant 0.000000e+00 : f32
      %27 = vector.broadcast %cst : f32 to vector<8x128xf32>
      %c0_31 = arith.constant 0 : index
      %c0_32 = arith.constant 0 : index
      %28 = vector.load %arg4[%c0_31, %c0_32] : memref<8x128xf32, #tpu.memory_space<vmem>>, vector<8x128xf32>
      tpu.vector_store %arg4[%c0_31, %c0_32], %27 {strides = array<i32>} : memref<8x128xf32, #tpu.memory_space<vmem>>, vector<8x128xf32>,
      %cst_33 = arith.constant 0.000000e+00 : f32
      %29 = vector.broadcast %cst_33 : f32 to vector<8x128xf32>
      %c0_34 = arith.constant 0 : index
      %c0_35 = arith.constant 0 : index
      %30 = vector.load %arg5[%c0_34, %c0_35] : memref<8x128xf32, #tpu.memory_space<vmem>>, vector<8x128xf32>
      tpu.vector_store %arg5[%c0_34, %c0_35], %29 {strides = array<i32>} : memref<8x128xf32, #tpu.memory_space<vmem>>, vector<8x128xf32>,
      %cst_36 = arith.constant 0.000000e+00 : f32
      %31 = vector.broadcast %cst_36 : f32 to vector<8x128xf32>
      %c0_37 = arith.constant 0 : index
      %c0_38 = arith.constant 0 : index
      %32 = vector.load %arg6[%c0_37, %c0_38] : memref<8x128xf32, #tpu.memory_space<vmem>>, vector<8x128xf32>
      tpu.vector_store %arg6[%c0_37, %c0_38], %31 {strides = array<i32>} : memref<8x128xf32, #tpu.memory_space<vmem>>, vector<8x128xf32>,
    } else {
    }
    %c0 = arith.constant 0 : index
    %c0_1 = arith.constant 0 : index
    %3 = vector.load %arg2[%c0, %c0_1] : memref<8x256xf32, #tpu.memory_space<vmem>>, vector<8x128xf32>
    %c0_2 = arith.constant 0 : index
    %c0_3 = arith.constant 0 : index
    %4 = vector.load %arg3[%c0_2, %c0_3] : memref<8x256xf32, #tpu.memory_space<vmem>>, vector<8x128xf32>
    %5 = arith.mulf %3, %4 : vector<8x128xf32>
    %c0_4 = arith.constant 0 : index
    %c0_5 = arith.constant 0 : index
    %6 = vector.load %arg4[%c0_4, %c0_5] : memref<8x128xf32, #tpu.memory_space<vmem>>, vector<8x128xf32>
    %7 = arith.addf %6, %5 : vector<8x128xf32>
    %c0_6 = arith.constant 0 : index
    %c0_7 = arith.constant 0 : index
    %8 = vector.load %arg4[%c0_6, %c0_7] : memref<8x128xf32, #tpu.memory_space<vmem>>, vector<8x128xf32>
    tpu.vector_store %arg4[%c0_6, %c0_7], %7 {strides = array<i32>} : memref<8x128xf32, #tpu.memory_space<vmem>>, vector<8x128xf32>,
    %c0_8 = arith.constant 0 : index
    %c0_9 = arith.constant 0 : index
    %9 = vector.load %arg5[%c0_8, %c0_9] : memref<8x128xf32, #tpu.memory_space<vmem>>, vector<8x128xf32>
    %10 = arith.addf %9, %3 : vector<8x128xf32>
    %c0_10 = arith.constant 0 : index
    %c0_11 = arith.constant 0 : index
    %11 = vector.load %arg5[%c0_10, %c0_11] : memref<8x128xf32, #tpu.memory_space<vmem>>, vector<8x128xf32>
    tpu.vector_store %arg5[%c0_10, %c0_11], %10 {strides = array<i32>} : memref<8x128xf32, #tpu.memory_space<vmem>>, vector<8x128xf32>,
    %c0_12 = arith.constant 0 : index
    %c0_13 = arith.constant 0 : index
    %12 = vector.load %arg6[%c0_12, %c0_13] : memref<8x128xf32, #tpu.memory_space<vmem>>, vector<8x128xf32>
    %13 = arith.addf %12, %4 : vector<8x128xf32>
    %c0_14 = arith.constant 0 : index
    %c0_15 = arith.constant 0 : index
    %14 = vector.load %arg6[%c0_14, %c0_15] : memref<8x128xf32, #tpu.memory_space<vmem>>, vector<8x128xf32>
    tpu.vector_store %arg6[%c0_14, %c0_15], %13 {strides = array<i32>} : memref<8x128xf32, #tpu.memory_space<vmem>>, vector<8x128xf32>,
    %c0_16 = arith.constant 0 : index
    %c128 = arith.constant 128 : index
    %15 = vector.load %arg2[%c0_16, %c128] : memref<8x256xf32, #tpu.memory_space<vmem>>, vector<8x128xf32>
    %c0_17 = arith.constant 0 : index
    %c128_18 = arith.constant 128 : index
    %16 = vector.load %arg3[%c0_17, %c128_18] : memref<8x256xf32, #tpu.memory_space<vmem>>, vector<8x128xf32>
    %17 = arith.mulf %15, %16 : vector<8x128xf32>
    %c0_19 = arith.constant 0 : index
    %c0_20 = arith.constant 0 : index
    %18 = vector.load %arg4[%c0_19, %c0_20] : memref<8x128xf32, #tpu.memory_space<vmem>>, vector<8x128xf32>
    %19 = arith.addf %18, %17 : vector<8x128xf32>
    %c0_21 = arith.constant 0 : index
    %c0_22 = arith.constant 0 : index
    %20 = vector.load %arg4[%c0_21, %c0_22] : memref<8x128xf32, #tpu.memory_space<vmem>>, vector<8x128xf32>
    tpu.vector_store %arg4[%c0_21, %c0_22], %19 {strides = array<i32>} : memref<8x128xf32, #tpu.memory_space<vmem>>, vector<8x128xf32>,
    %c0_23 = arith.constant 0 : index
    %c0_24 = arith.constant 0 : index
    %21 = vector.load %arg5[%c0_23, %c0_24] : memref<8x128xf32, #tpu.memory_space<vmem>>, vector<8x128xf32>
    %22 = arith.addf %21, %15 : vector<8x128xf32>
    %c0_25 = arith.constant 0 : index
    %c0_26 = arith.constant 0 : index
    %23 = vector.load %arg5[%c0_25, %c0_26] : memref<8x128xf32, #tpu.memory_space<vmem>>, vector<8x128xf32>
    tpu.vector_store %arg5[%c0_25, %c0_26], %22 {strides = array<i32>} : memref<8x128xf32, #tpu.memory_space<vmem>>, vector<8x128xf32>,
    %c0_27 = arith.constant 0 : index
    %c0_28 = arith.constant 0 : index
    %24 = vector.load %arg6[%c0_27, %c0_28] : memref<8x128xf32, #tpu.memory_space<vmem>>, vector<8x128xf32>
    %25 = arith.addf %24, %16 : vector<8x128xf32>
    %c0_29 = arith.constant 0 : index
    %c0_30 = arith.constant 0 : index
    %26 = vector.load %arg6[%c0_29, %c0_30] : memref<8x128xf32, #tpu.memory_space<vmem>>, vector<8x128xf32>
    tpu.vector_store %arg6[%c0_29, %c0_30], %25 {strides = array<i32>} : memref<8x128xf32, #tpu.memory_space<vmem>>, vector<8x128xf32>,
    return
  }
  func.func @transform_0(%arg0: i32, %arg1: i32) -> (i32, i32) {
    %c0_i32 = arith.constant 0 : i32
    return %arg0, %arg1 : i32, i32
  }
  func.func @transform_1(%arg0: i32, %arg1: i32) -> (i32, i32) {
    %c0_i32 = arith.constant 0 : i32
    return %arg0, %arg1 : i32, i32
  }
  func.func @transform_2(%arg0: i32, %arg1: i32) -> (i32, i32) {
    %c0_i32 = arith.constant 0 : i32
    %c0_i32_0 = arith.constant 0 : i32
    return %arg0, %c0_i32 : i32, i32
  }
  func.func @transform_3(%arg0: i32, %arg1: i32) -> (i32, i32) {
    %c0_i32 = arith.constant 0 : i32
    %c0_i32_0 = arith.constant 0 : i32
    return %arg0, %c0_i32 : i32, i32
  }
  func.func @transform_4(%arg0: i32, %arg1: i32) -> (i32, i32) {
    %c0_i32 = arith.constant 0 : i32
    %c0_i32_0 = arith.constant 0 : i32
    return %arg0, %c0_i32 : i32, i32
  }
}

</mosaic_0001>

<bundles_post_ra>
// kernel: tpu_custom_call.1
= control target key start
LH: loop header
LB: loop body
LE: loop exit
PB: predicated region body
PF: predicated region fallthrough
CT: control target
= control target key end

     0   :  { %10 = vsyncpa [#allocation3], 0  ;;  %s303_s0 = inlined_call_operand.hbm [shape: f32[8,256], index: 0, kind: input, shape index: {}]   ;;  %s304_s1 = inlined_call_operand.hbm [shape: f32[8,256], index: 1, kind: input, shape index: {}]   ;;  %s305_s2 = inlined_call_operand.hbm [shape: f32[8,128], index: 2, kind: output, shape index: {0}]   ;;  %s306_s3 = inlined_call_operand.hbm [shape: f32[8,128], index: 3, kind: output, shape index: {1}]   ;;  %s307_s4 = inlined_call_operand.hbm [shape: f32[8,128], index: 4, kind: output, shape index: {2}]  }
   0x1   :  { %11 = vsyncpa [#allocation6], 0 }
   0x2   :  { %12 = vsyncpa [#allocation4], 0 }
   0x3   :  { %13 = vsyncpa [#allocation9], 0  ;;  %s19_s17 = sshll.u32 %s303_s0, 4  ;;  %s258_s18 = smov [#allocation2]   ;;  %s20_s17 = int_to_ptr.hbm [resolvable:$true] %s19_s17 }
   0x4   :  { %s21_s19 = sshll.u32 %s258_s18, 4  ;;  %s30_s22 = sshll.u32 %s304_s1, 4  ;;  %s22_s19 = int_to_ptr.vmem [resolvable:$true] %s21_s19  ;;  %s31_s22 = int_to_ptr.hbm [resolvable:$true] %s30_s22 }
   0x5   :  { %24 = dma.hbm_to_vmem [thread:$0]  %s20_s17, 256, %s22_s19, [#allocation3]  }
   0x6   :  { %s259_s23 = smov [#allocation5]  }
   0x7   :  { %s32_s24 = sshll.u32 %s259_s23, 4  ;;  %s33_s24 = int_to_ptr.vmem [resolvable:$true] %s32_s24 }
   0x8   :  { %35 = dma.hbm_to_vmem [thread:$0]  %s31_s22, 256, %s33_s24, [#allocation6]  }
   0x9   :  { %250 = dma.done.wait [#allocation3], 256  }
   0xa   :  { %251 = vsyncadd [#allocation3], 4294967040 }
   0xb   :  { %252 = dma.done.wait [#allocation6], 256  }
   0xc   :  { %253 = vsyncadd [#allocation6], 4294967040  ;;  %v51_v0 = vld [vmem:[#allocation2] sm:$0xff]  ;;  %v52_v1 = vld [vmem:[#allocation5] sm:$0xff]  ;;  %s260_s0 = smov [#allocation8]   ;;  %s93_s28 = sshll.u32 %s306_s3, 4  ;;  %s94_s28 = int_to_ptr.hbm [resolvable:$true] %s93_s28 }
   0xd   :  { %v63_v2 = vld [vmem:[#allocation2 + $0x8] sm:$0xff]  ;;  %s91_s25 = sshll.u32 %s260_s0, 4  ;;  %v53_v3 = vmul.f32 %v52_v1, %v51_v0  ;;  %v64_v4 = vld [vmem:[#allocation5 + $0x8] sm:$0xff]  ;;  %s261_s1 = smov [#allocation10]   ;;  %s92_s25 = int_to_ptr.vmem [resolvable:$true] %s91_s25 }
   0xe   :  { %s102_s29 = sshll.u32 %s261_s1, 4  ;;  %s104_s6 = sshll.u32 %s307_s4, 4  ;;  %v65_v5 = vmul.f32 %v64_v4, %v63_v2  ;;  %v70_v6 = vadd.f32 %v63_v2, %v51_v0  ;;  %v73_v7 = vadd.f32 %v64_v4, %v52_v1  ;;  %s103_s29 = int_to_ptr.vmem [resolvable:$true] %s102_s29  ;;  %s105_s6 = int_to_ptr.hbm [resolvable:$true] %s104_s6 }
   0xf   :  { %s262_s7 = smov [#allocation7]   ;;  %s82_s11 = sshll.u32 %s305_s2, 4  ;;  %s83_s11 = int_to_ptr.hbm [resolvable:$true] %s82_s11 }
  0x10   :  { %s80_s8 = sshll.u32 %s262_s7, 4  ;;  %71 = vst [vmem:[#allocation8] sm:$0xff] %v70_v6  ;;  %v67_v8 = vadd.f32 %v65_v5, %v53_v3  ;;  %s81_s8 = int_to_ptr.vmem [resolvable:$true] %s80_s8 }
  0x11   :  { %74 = vst [vmem:[#allocation10] sm:$0xff] %v73_v7  ;;  %96 = dma.vmem_to_hbm [thread:$0]  %s92_s25, 128, %s94_s28, [#allocation9]  }
  0x12   :  { %68 = vst [vmem:[#allocation7] sm:$0xff] %v67_v8  ;;  %107 = dma.vmem_to_hbm [thread:$0]  %s103_s29, 128, %s105_s6, [#allocation9]  }
  0x13   :  { %85 = dma.vmem_to_hbm [thread:$0]  %s81_s8, 128, %s83_s11, [#allocation4]  }
  0x14   :  { %254 = dma.done.wait [#allocation4], 128  }
  0x15   :  { %255 = vsyncadd [#allocation4], 4294967168 }
  0x16   :  { %256 = dma.done.wait [#allocation9], 256  }
  0x17   :  { %257 = vsyncadd [#allocation9], 4294967040 }
  0x18   :  { %120 = vsyncpa [#allocation3], 1 }
  0x19   :  { %121 = vsyncpa [#allocation6], 1 }
  0x1a   :  { %122 = vsyncpa [#allocation4], 1 }
  0x1b   :  { %123 = vsyncpa [#allocation9], 1 }

</bundles_post_ra>
